<compile_context>
chip_gen: v7x
topology: tpu7x:2x2x1
jax: 0.10.0
libtpu: 0.0.40
codegen_flags: <defaults>
</compile_context>

<pallas_src>
import functools
import math

import jax
import jax.numpy as jnp
from jax.experimental import pallas as pl
from jax.experimental.pallas import tpu as pltpu


# ----------------------------------------------------------------------------
# small helpers
# ----------------------------------------------------------------------------
def _round_up(x, m):
    return (x + m - 1) // m * m


def _pick_m(m):
    """Padded size + tile for the row (token) dimension (sublane-aligned)."""
    if m > 512:
        return _round_up(m, 256), 256
    p = _round_up(m, 8)
    return p, p


def _pick_kn(d, align=128, max_tile=512):
    """Padded size + tile for a lane-aligned (K or N) dimension."""
    if d > max_tile:
        return _round_up(d, max_tile), max_tile
    p = _round_up(d, align)
    return p, p


def _same_pad_amounts(size, k, stride):
    """Exactly replicates Conv3DSamePadding / MaxPool3dSame padding math."""
    pad = max((math.ceil(size / stride) - 1) * stride + k - size, 0)
    if size % stride != 0:
        pad += 1
    return pad // 2, pad - pad // 2


def _pad_same_3d(x, ksize, stride, value=0.0):
    """x: (N, T, H, W, C) -> same-padded along T/H/W (constant `value`, as torch F.pad)."""
    pads = [(0, 0)]
    for i, dim in enumerate(x.shape[1:4]):
        lo, hi = _same_pad_amounts(dim, ksize[i], stride[i])
        pads.append((lo, hi))
    pads.append((0, 0))
    return jnp.pad(x, pads, constant_values=value)


# ----------------------------------------------------------------------------
# Kernel 1: tiled matmul + per-column scale/bias + activation (conv-as-matmul)
# ----------------------------------------------------------------------------
def _matmul_fused_kernel(x_ref, w_ref, s_ref, b_ref, o_ref, acc_ref, *, act):
    @pl.when(pl.program_id(2) == 0)
    def _():
        acc_ref[...] = jnp.zeros_like(acc_ref)

    acc_ref[...] += jnp.dot(x_ref[...], w_ref[...],
                            preferred_element_type=jnp.float32)

    @pl.when(pl.program_id(2) == pl.num_programs(2) - 1)
    def _():
        y = acc_ref[...] * s_ref[...] + b_ref[...]
        if act == "relu":
            y = jnp.maximum(y, 0.0)
        elif act == "sigmoid":
            y = jax.nn.sigmoid(y)
        o_ref[...] = y.astype(o_ref.dtype)


@functools.lru_cache(maxsize=None)
def _build_matmul(Mp, Kp, Np, tm, tk, tn, act):
    kernel = functools.partial(_matmul_fused_kernel, act=act)
    return pl.pallas_call(
        kernel,
        out_shape=jax.ShapeDtypeStruct((Mp, Np), jnp.float32),
        grid_spec=pltpu.PrefetchScalarGridSpec(
            num_scalar_prefetch=0,
            grid=(Mp // tm, Np // tn, Kp // tk),
            in_specs=[
                pl.BlockSpec((tm, tk), lambda i, j, k: (i, k)),
                pl.BlockSpec((tk, tn), lambda i, j, k: (k, j)),
                pl.BlockSpec((1, tn), lambda i, j, k: (0, j)),
                pl.BlockSpec((1, tn), lambda i, j, k: (0, j)),
            ],
            out_specs=pl.BlockSpec((tm, tn), lambda i, j, k: (i, j)),
            scratch_shapes=[pltpu.VMEM((tm, tn), jnp.float32)],
        ),
        compiler_params=pltpu.CompilerParams(
            dimension_semantics=("parallel", "parallel", "arbitrary")),
        cost_estimate=pl.CostEstimate(
            flops=2 * Mp * Kp * Np,
            transcendentals=0,
            bytes_accessed=4 * (Mp * Kp + Kp * Np + Mp * Np)),
    )


def matmul_fused(x, w, scale, bias, act):
    """y = act((x @ w) * scale + bias).  x:(M,K) w:(K,N) scale/bias:(N,)."""
    M, K = x.shape
    _, N = w.shape
    Mp, tm = _pick_m(M)
    Kp, tk = _pick_kn(K)
    Np, tn = _pick_kn(N)
    xp = jnp.pad(x, ((0, Mp - M), (0, Kp - K)))
    wp = jnp.pad(w, ((0, Kp - K), (0, Np - N)))
    sp = jnp.pad(scale.astype(jnp.float32), (0, Np - N)).reshape(1, Np)
    bp = jnp.pad(bias.astype(jnp.float32), (0, Np - N)).reshape(1, Np)
    y = _build_matmul(Mp, Kp, Np, tm, tk, tn, act)(xp, wp, sp, bp)
    return y[:M, :N]


# ----------------------------------------------------------------------------
# Kernel 2: fused branch tail: global avg-pool + 1x1x1 conv + sigmoid + gate-mul
# (avgpool kernel == spatial extent, then repeat -> exact global mean broadcast)
# ----------------------------------------------------------------------------
def _gate_kernel(x_ref, w_ref, b_ref, o_ref, *, inv_s):
    x = x_ref[0]                                              # (Sp, Cp)
    mean = jnp.sum(x, axis=0, keepdims=True) * inv_s          # (1, Cp)
    g = jnp.dot(mean, w_ref[...], preferred_element_type=jnp.float32) + b_ref[...]
    g = jax.nn.sigmoid(g)                                     # (1, Cp)
    o_ref[0] = (x * g).astype(o_ref.dtype)


@functools.lru_cache(maxsize=None)
def _build_gate(Nb, Sp, Cp, inv_s):
    kernel = functools.partial(_gate_kernel, inv_s=inv_s)
    return pl.pallas_call(
        kernel,
        out_shape=jax.ShapeDtypeStruct((Nb, Sp, Cp), jnp.float32),
        grid_spec=pltpu.PrefetchScalarGridSpec(
            num_scalar_prefetch=0,
            grid=(Nb,),
            in_specs=[
                pl.BlockSpec((1, Sp, Cp), lambda n: (n, 0, 0)),
                pl.BlockSpec((Cp, Cp), lambda n: (0, 0)),
                pl.BlockSpec((1, Cp), lambda n: (0, 0)),
            ],
            out_specs=pl.BlockSpec((1, Sp, Cp), lambda n: (n, 0, 0)),
        ),
        compiler_params=pltpu.CompilerParams(dimension_semantics=("parallel",)),
        cost_estimate=pl.CostEstimate(
            flops=2 * Nb * (Sp * Cp + Cp * Cp),
            transcendentals=Nb * Cp,
            bytes_accessed=4 * (2 * Nb * Sp * Cp + Cp * Cp)),
    )


def global_gate(relu_out, w, bias=None):
    """out = sigmoid(conv1x1(global_avg_pool(relu_out))) * relu_out  (broadcast over spatial)."""
    Nb, T, H, W, C = relu_out.shape
    S = T * H * W
    Sp = _round_up(S, 8)
    Cp = _round_up(C, 128)
    x = relu_out.reshape(Nb, S, C)
    xp = jnp.pad(x, ((0, 0), (0, Sp - S), (0, Cp - C)))
    wp = jnp.pad(w, ((0, Cp - C), (0, Cp - C)))
    if bias is None:
        bias = jnp.zeros((C,), jnp.float32)
    bp = jnp.pad(bias.astype(jnp.float32), (0, Cp - C)).reshape(1, Cp)
    y = _build_gate(Nb, Sp, Cp, 1.0 / S)(xp, wp, bp)
    return y[:, :S, :C].reshape(Nb, T, H, W, C)


# ----------------------------------------------------------------------------
# Kernel 3: max over pooling taps (MaxPool3dSame)
# ----------------------------------------------------------------------------
def _max_taps_kernel(x_ref, o_ref):
    o_ref[...] = jnp.max(x_ref[...], axis=0)


@functools.lru_cache(maxsize=None)
def _build_max_taps(n_taps, Mp, Cp, tm):
    return pl.pallas_call(
        _max_taps_kernel,
        out_shape=jax.ShapeDtypeStruct((Mp, Cp), jnp.float32),
        grid_spec=pltpu.PrefetchScalarGridSpec(
            num_scalar_prefetch=0,
            grid=(Mp // tm,),
            in_specs=[pl.BlockSpec((n_taps, tm, Cp), lambda i: (0, i, 0))],
            out_specs=pl.BlockSpec((tm, Cp), lambda i: (i, 0)),
        ),
        compiler_params=pltpu.CompilerParams(dimension_semantics=("parallel",)),
        cost_estimate=pl.CostEstimate(
            flops=n_taps * Mp * Cp,
            transcendentals=0,
            bytes_accessed=4 * (n_taps + 1) * Mp * Cp),
    )


def maxpool3d_same(x, ksize, stride):
    """MaxPool3dSame: zero-pad (as torch F.pad) then max-pool with no extra padding."""
    Nb, T, H, W, C = x.shape
    xp = _pad_same_3d(x, ksize, stride, value=0.0)
    Tp, Hp, Wp = xp.shape[1:4]
    kT, kH, kW = ksize
    sT, sH, sW = stride
    To = (Tp - kT) // sT + 1
    Ho = (Hp - kH) // sH + 1
    Wo = (Wp - kW) // sW + 1
    taps = []
    for dt in range(kT):
        for dh in range(kH):
            for dw in range(kW):
                taps.append(xp[:, dt:dt + sT * To:sT,
                               dh:dh + sH * Ho:sH,
                               dw:dw + sW * Wo:sW, :])
    n_taps = len(taps)
    M = Nb * To * Ho * Wo
    stacked = jnp.stack(taps, axis=0).reshape(n_taps, M, C)
    Cp = _round_up(C, 128)
    tm_cap = max(8, ((2 << 20) // (n_taps * Cp * 4)) // 8 * 8)
    tm = min(_round_up(M, 8), 256, tm_cap)
    Mp = _round_up(M, tm)
    stacked = jnp.pad(stacked, ((0, 0), (0, Mp - M), (0, Cp - C)))
    y = _build_max_taps(n_taps, Mp, Cp, tm)(stacked)
    return y[:M, :C].reshape(Nb, To, Ho, Wo, C)


# ----------------------------------------------------------------------------
# Conv3DSamePadding (+ folded BN / bias / activation) via im2col + Pallas matmul
# ----------------------------------------------------------------------------
def conv3d_same(x, w, *, stride=(1, 1, 1), scale=None, bias=None, act="none"):
    """x:(N,T,H,W,Cin)  w:(kT,kH,kW,Cin,Cout) -> act(conv(x,w)*scale + bias), NDHWC."""
    Nb, T, H, W, Cin = x.shape
    kT, kH, kW, _, Cout = w.shape
    sT, sH, sW = stride
    xp = _pad_same_3d(x, (kT, kH, kW), stride, value=0.0)
    Tp, Hp, Wp = xp.shape[1:4]
    To = (Tp - kT) // sT + 1
    Ho = (Hp - kH) // sH + 1
    Wo = (Wp - kW) // sW + 1
    patches = []
    for dt in range(kT):
        for dh in range(kH):
            for dw in range(kW):
                patches.append(xp[:, dt:dt + sT * To:sT,
                                  dh:dh + sH * Ho:sH,
                                  dw:dw + sW * Wo:sW, :])
    patches = jnp.concatenate(patches, axis=-1)
    xm = patches.reshape(Nb * To * Ho * Wo, kT * kH * kW * Cin)
    wm = w.reshape(kT * kH * kW * Cin, Cout)
    if scale is None:
        scale = jnp.ones((Cout,), jnp.float32)
    if bias is None:
        bias = jnp.zeros((Cout,), jnp.float32)
    y = matmul_fused(xm, wm, scale, bias, act)
    return y.reshape(Nb, To, Ho, Wo, Cout)


# ----------------------------------------------------------------------------
# Parameter construction (random, deterministic) and module forward functions
# ----------------------------------------------------------------------------
class KeyGen:
    def __init__(self, key):
        self.key = key

    def __call__(self):
        self.key, sub = jax.random.split(self.key)
        return sub


def _init_conv(key, k, cin, cout):
    std = (2.0 / (k[0] * k[1] * k[2] * cin)) ** 0.5
    return std * jax.random.normal(key, (k[0], k[1], k[2], cin, cout), jnp.float32)


def _init_bn(key, c):
    k1, k2, k3, k4 = jax.random.split(key, 4)
    gamma = 1.0 + 0.1 * jax.random.normal(k1, (c,), jnp.float32)
    beta = 0.1 * jax.random.normal(k2, (c,), jnp.float32)
    mean = 0.1 * jax.random.normal(k3, (c,), jnp.float32)
    var = jax.random.uniform(k4, (c,), jnp.float32, 0.5, 1.5)
    scale = gamma / jnp.sqrt(var + 1e-5)
    bias = beta - mean * scale
    return scale, bias


def init_conv_bn(kg, k, cin, cout):
    s, b = _init_bn(kg(), cout)
    return dict(w=_init_conv(kg(), k, cin, cout), scale=s, bias=b)


def init_b1b2(kg, cin, c1, c2):
    return dict(
        conv1=init_conv_bn(kg, (1, 1, 1), cin, c1),
        conv2=init_conv_bn(kg, (1, 3, 3), c1, c2),
        w3=_init_conv(kg(), (3, 1, 1), c2, c2),
        b3=0.05 * jax.random.normal(kg(), (c2,), jnp.float32),
        w4=_init_conv(kg(), (1, 1, 1), c2, c2),
    )


def init_b0b3(kg, cin, cout):
    return dict(conv1=init_conv_bn(kg, (1, 1, 1), cin, cout),
                w2=_init_conv(kg(), (1, 1, 1), cout, cout))


# (conv1_in, b0_out, b1_c1, b1_c2, b2_c1, b2_c2, b3_out) — exactly the spec's configs.
MIXED_CFGS = [
    (192, 64, 96, 128, 16, 32, 32),
    (256, 128, 128, 192, 32, 96, 64),
    (480, 192, 96, 208, 16, 48, 64),
    (512, 160, 112, 224, 24, 64, 64),
    (512, 128, 128, 256, 24, 64, 64),
    (512, 112, 144, 288, 32, 64, 64),
    (528, 256, 160, 320, 32, 128, 128),
    (832, 256, 160, 320, 32, 128, 128),
    (832, 384, 192, 384, 48, 128, 128),
]


def init_mixed(kg, cfg):
    cin, b0, b1c1, b1c2, b2c1, b2c2, b3 = cfg
    return dict(b0=init_b0b3(kg, cin, b0),
                b1=init_b1b2(kg, cin, b1c1, b1c2),
                b2=init_b1b2(kg, cin, b2c1, b2c2),
                b3=init_b0b3(kg, cin, b3))


def init_inception_mixed_block(key):
    kg = KeyGen(key)
    return dict(stem=init_conv_bn(kg, (3, 7, 7), 3, 64),
                pre=init_b1b2(kg, 64, 64, 192),
                mixed=[init_mixed(kg, c) for c in MIXED_CFGS])


def conv_bn_relu(p, x, stride=(1, 1, 1)):
    return conv3d_same(x, p["w"], stride=stride, scale=p["scale"],
                       bias=p["bias"], act="relu")


def b1b2_forward(p, x):
    x = conv_bn_relu(p["conv1"], x)
    x = conv_bn_relu(p["conv2"], x)
    relu_out = conv3d_same(x, p["w3"], scale=None, bias=p["b3"], act="relu")
    c2 = p["w4"].shape[-1]
    return global_gate(relu_out, p["w4"].reshape(c2, c2))


def b0b3_forward(p, x, include_maxpool=False):
    if include_maxpool:
        x = maxpool3d_same(x, (3, 3, 3), (1, 1, 1))
    relu_out = conv_bn_relu(p["conv1"], x)
    c = p["w2"].shape[-1]
    return global_gate(relu_out, p["w2"].reshape(c, c))


def mixed_forward(p, x):
    return jnp.concatenate([
        b0b3_forward(p["b0"], x),
        b1b2_forward(p["b1"], x),
        b1b2_forward(p["b2"], x),
        b0b3_forward(p["b3"], x, include_maxpool=True),
    ], axis=-1)


def inception_mixed_block_forward(params, x):
    x = conv_bn_relu(params["stem"], x, stride=(2, 2, 2))
    x = maxpool3d_same(x, (1, 3, 3), (1, 2, 2))
    x = b1b2_forward(params["pre"], x)
    x = maxpool3d_same(x, (1, 3, 3), (1, 2, 2))
    x = mixed_forward(params["mixed"][0], x)   # 3b
    x = mixed_forward(params["mixed"][1], x)   # 3c
    x = maxpool3d_same(x, (3, 3, 3), (2, 2, 2))
    for i in range(2, 7):                      # 4b..4f
        x = mixed_forward(params["mixed"][i], x)
    x = maxpool3d_same(x, (2, 2, 2), (2, 2, 2))
    x = mixed_forward(params["mixed"][7], x)   # 5b
    x = mixed_forward(params["mixed"][8], x)   # 5c
    return x


# ----------------------------------------------------------------------------
# main
# ----------------------------------------------------------------------------
if __name__ == "__main__":
    key = jax.random.PRNGKey(0)
    k_param, k_x, k_t = jax.random.split(key, 3)

    # --- primitive self-checks against plain-JAX references ------------------
    a = jax.random.normal(jax.random.fold_in(k_t, 0), (23, 37), jnp.float32)
    b = jax.random.normal(jax.random.fold_in(k_t, 1), (37, 51), jnp.float32)
    s = 1.0 + 0.1 * jax.random.normal(jax.random.fold_in(k_t, 2), (51,), jnp.float32)
    c = 0.1 * jax.random.normal(jax.random.fold_in(k_t, 3), (51,), jnp.float32)
    got = matmul_fused(a, b, s, c, "relu")
    ref = jnp.maximum(a @ b * s + c, 0.0)
    assert bool(jnp.allclose(got, ref, rtol=2e-2, atol=2e-2))

    r = jnp.abs(jax.random.normal(jax.random.fold_in(k_t, 4), (2, 2, 3, 5, 40), jnp.float32))
    wg = 0.1 * jax.random.normal(jax.random.fold_in(k_t, 5), (40, 40), jnp.float32)
    got = global_gate(r, wg)
    m = jnp.mean(r.reshape(2, -1, 40), axis=1)
    ref = r * jax.nn.sigmoid(m @ wg)[:, None, None, None, :]
    assert bool(jnp.allclose(got, ref, rtol=2e-2, atol=2e-2))

    mp_in = jnp.abs(jax.random.normal(jax.random.fold_in(k_t, 6), (1, 4, 7, 9, 12), jnp.float32))
    got = maxpool3d_same(mp_in, (3, 3, 3), (2, 2, 2))
    padded = _pad_same_3d(mp_in, (3, 3, 3), (2, 2, 2), 0.0)
    ref = jax.lax.reduce_window(padded, -jnp.inf, jax.lax.max,
                                (1, 3, 3, 3, 1), (1, 2, 2, 2, 1), "VALID")
    assert got.shape == ref.shape and bool(jnp.allclose(got, ref))

    # --- full InceptionMixedBlock forward ------------------------------------
    # Small NDHWC input (N, T, H, W, C) = (2, 5, 32, 48, 3); the architecture's
    # stride chain makes every branch's avg-pool a global spatial mean, exactly
    # as in the original module (whose hard-coded pool shapes imply a 180x320 input).
    params = init_inception_mixed_block(k_param)
    x = jax.random.normal(k_x, (2, 5, 32, 48, 3), jnp.float32)

    out = inception_mixed_block_forward(params, x)
    out = jax.block_until_ready(out)

    assert out.shape == (2, 1, 1, 2, 1024), out.shape
    assert bool(jnp.all(jnp.isfinite(out)))
    print("KERNEL_OK")
</pallas_src>

<mosaic_0001>
module attributes {stable_mosaic.version = 11 : i64} {
  func.func @_matmul_fused_kernel(%arg0: i32, %arg1: i32, %arg2: i32, %arg3: memref<24x128xf32, #tpu.memory_space<vmem>>, %arg4: memref<128x128xf32, #tpu.memory_space<vmem>>, %arg5: memref<1x128xf32, #tpu.memory_space<vmem>>, %arg6: memref<1x128xf32, #tpu.memory_space<vmem>>, %arg7: memref<24x128xf32, #tpu.memory_space<vmem>>, %arg8: memref<24x128xf32, #tpu.memory_space<vmem>>) attributes {dimension_semantics = [#tpu.dimension_semantics<parallel>, #tpu.dimension_semantics<parallel>, #tpu.dimension_semantics<arbitrary>], iteration_bounds = array<i64: 1, 1, 1>, scalar_prefetch = 0 : i64, scratch_operands = 1 : i64, tpu.core_type = #tpu.core_type<tc>, window_params = [{transform_indices = @transform_0, window_bounds = array<i64: 24, 128>}, {transform_indices = @transform_1, window_bounds = array<i64: 128, 128>}, {transform_indices = @transform_2, window_bounds = array<i64: 1, 128>}, {transform_indices = @transform_3, window_bounds = array<i64: 1, 128>}, {transform_indices = @transform_4, window_bounds = array<i64: 24, 128>}]} {
    %c0_i32 = arith.constant 0 : i32
    %0 = arith.cmpi eq, %arg2, %c0_i32 : i32
    %1 = arith.extui %0 : i1 to i32
    %c0_i32_0 = arith.constant 0 : i32
    %2 = arith.cmpi ne, %1, %c0_i32_0 : i32
    scf.if %2 {
      %cst_10 = arith.constant 0.000000e+00 : f32
      %12 = vector.broadcast %cst_10 : f32 to vector<24x128xf32>
      %c0_11 = arith.constant 0 : index
      %c0_12 = arith.constant 0 : index
      %13 = vector.load %arg8[%c0_11, %c0_12] : memref<24x128xf32, #tpu.memory_space<vmem>>, vector<24x128xf32>
      tpu.vector_store %arg8[%c0_11, %c0_12], %12 {strides = array<i32>} : memref<24x128xf32, #tpu.memory_space<vmem>>, vector<24x128xf32>,
    } else {
    }
    %c0 = arith.constant 0 : index
    %c0_1 = arith.constant 0 : index
    %3 = vector.load %arg8[%c0, %c0_1] : memref<24x128xf32, #tpu.memory_space<vmem>>, vector<24x128xf32>
    %c0_2 = arith.constant 0 : index
    %c0_3 = arith.constant 0 : index
    %4 = vector.load %arg3[%c0_2, %c0_3] : memref<24x128xf32, #tpu.memory_space<vmem>>, vector<24x128xf32>
    %c0_4 = arith.constant 0 : index
    %c0_5 = arith.constant 0 : index
    %5 = vector.load %arg4[%c0_4, %c0_5] : memref<128x128xf32, #tpu.memory_space<vmem>>, vector<128x128xf32>
    %cst = arith.constant dense<0.000000e+00> : vector<24x128xf32>
    %6 = tpu.matmul %4, %5, %cst {dimension_numbers = #tpu.dot_dimension_numbers<[1], [0], [0], [1], [0, 0, 1, 1], [], []>} : vector<24x128xf32>, vector<128x128xf32>, vector<24x128xf32> -> vector<24x128xf32>
    %7 = arith.addf %3, %6 : vector<24x128xf32>
    %c0_6 = arith.constant 0 : index
    %c0_7 = arith.constant 0 : index
    %8 = vector.load %arg8[%c0_6, %c0_7] : memref<24x128xf32, #tpu.memory_space<vmem>>, vector<24x128xf32>
    tpu.vector_store %arg8[%c0_6, %c0_7], %7 {strides = array<i32>} : memref<24x128xf32, #tpu.memory_space<vmem>>, vector<24x128xf32>,
    %c0_i32_8 = arith.constant 0 : i32
    %9 = arith.cmpi eq, %arg2, %c0_i32_8 : i32
    %10 = arith.extui %9 : i1 to i32
    %c0_i32_9 = arith.constant 0 : i32
    %11 = arith.cmpi ne, %10, %c0_i32_9 : i32
    scf.if %11 {
      %c0_10 = arith.constant 0 : index
      %c0_11 = arith.constant 0 : index
      %12 = vector.load %arg8[%c0_10, %c0_11] : memref<24x128xf32, #tpu.memory_space<vmem>>, vector<24x128xf32>
      %c0_12 = arith.constant 0 : index
      %c0_13 = arith.constant 0 : index
      %13 = vector.load %arg5[%c0_12, %c0_13] : memref<1x128xf32, #tpu.memory_space<vmem>>, vector<1x128xf32>
      %14 = vector.broadcast %13 : vector<1x128xf32> to vector<24x128xf32>
      %15 = arith.mulf %12, %14 : vector<24x128xf32>
      %c0_14 = arith.constant 0 : index
      %c0_15 = arith.constant 0 : index
      %16 = vector.load %arg6[%c0_14, %c0_15] : memref<1x128xf32, #tpu.memory_space<vmem>>, vector<1x128xf32>
      %17 = vector.broadcast %16 : vector<1x128xf32> to vector<24x128xf32>
      %18 = arith.addf %15, %17 : vector<24x128xf32>
      %cst_16 = arith.constant 0.000000e+00 : f32
      %19 = vector.broadcast %cst_16 : f32 to vector<24x128xf32>
      %20 = arith.maximumf %18, %19 : vector<24x128xf32>
      %c0_17 = arith.constant 0 : index
      %c0_18 = arith.constant 0 : index
      %21 = vector.load %arg7[%c0_17, %c0_18] : memref<24x128xf32, #tpu.memory_space<vmem>>, vector<24x128xf32>
      tpu.vector_store %arg7[%c0_17, %c0_18], %20 {strides = array<i32>} : memref<24x128xf32, #tpu.memory_space<vmem>>, vector<24x128xf32>,
    } else {
    }
    return
  }
  func.func @transform_0(%arg0: i32, %arg1: i32, %arg2: i32) -> (i32, i32) {
    %c0_i32 = arith.constant 0 : i32
    return %arg0, %arg2 : i32, i32
  }
  func.func @transform_1(%arg0: i32, %arg1: i32, %arg2: i32) -> (i32, i32) {
    %c0_i32 = arith.constant 0 : i32
    return %arg2, %arg1 : i32, i32
  }
  func.func @transform_2(%arg0: i32, %arg1: i32, %arg2: i32) -> (i32, i32) {
    %c0_i32 = arith.constant 0 : i32
    %c0_i32_0 = arith.constant 0 : i32
    return %c0_i32, %arg1 : i32, i32
  }
  func.func @transform_3(%arg0: i32, %arg1: i32, %arg2: i32) -> (i32, i32) {
    %c0_i32 = arith.constant 0 : i32
    %c0_i32_0 = arith.constant 0 : i32
    return %c0_i32, %arg1 : i32, i32
  }
  func.func @transform_4(%arg0: i32, %arg1: i32, %arg2: i32) -> (i32, i32) {
    %c0_i32 = arith.constant 0 : i32
    return %arg0, %arg1 : i32, i32
  }
}

</mosaic_0001>

<bundles_post_ra>
// kernel: tpu_custom_call.1
= control target key start
LH: loop header
LB: loop body
LE: loop exit
PB: predicated region body
PF: predicated region fallthrough
CT: control target
= control target key end

     0   :  { %9 = vsyncpa [#allocation4], 0  ;;  %s480_s0 = inlined_call_operand.hbm [shape: f32[24,128], index: 0, kind: input, shape index: {}]   ;;  %s481_s1 = inlined_call_operand.hbm [shape: f32[128,128], index: 1, kind: input, shape index: {}]   ;;  %s482_s2 = inlined_call_operand.vmem [shape: f32[1,128], index: 2, kind: input, shape index: {}]   ;;  %s483_s3 = inlined_call_operand.vmem [shape: f32[1,128], index: 3, kind: input, shape index: {}]   ;;  %s484_s4 = inlined_call_operand.hbm [shape: f32[24,128], index: 4, kind: output, shape index: {}]  }
   0x1   :  { %10 = vsyncpa [#allocation7], 0 }
   0x2   :  { %11 = vsyncpa [#allocation5], 0  ;;  %s393_s15 = smov [#allocation3]   ;;  %s321_s19 = scalar_lea.hbm %s480_s0, 384 }
   0x3   :  { %s17_s16 = sshll.u32 %s393_s15, 4  ;;  %p322_p0 = scmp.ne.s32.totalorder %s480_s0, %s321_s19  ;;  %s18_s16 = int_to_ptr.vmem [resolvable:$true] %s17_s16 }
   0x4   :  { %p325_p1 = scmp.lt.u32.totalorder %s321_s19, %s480_s0 }
   0x6   :  { %p327_p2 = pnand %p325_p1, %p322_p0 }
   0x8   :  { %330 = shalt.err (!%p327_p2)
}
   0x9   :  { %s331_s24 = scalar_lea.vmem %s18_s16, 384  ;;  %p336_p4 = scmp.lt.s32.totalorder %s18_s16, %s18_s16 }
   0xa   :  { %p332_p3 = scmp.ne.s32.totalorder %s18_s16, %s331_s24  ;;  %p337_p5 = scmp.lt.s32.totalorder %s331_s24, %s331_s24 }
   0xc   :  { %p338_p6 = por %p337_p5, %p336_p4 }
   0xe   :  { %p339_p7 = pnand %p338_p6, %p332_p3 }
  0x10   :  { %342 = shalt.err (!%p339_p7)
}
  0x11   :  { %s394_s25 = smov 128   ;;  %s395_s26 = smov 8  }
  0x12   :  { %23 = dma.hbm_to_vmem [thread:$0]  %s480_s0, 384, %s18_s16, [#allocation4], %s394_s25, %s394_s25, %s395_s26  }
  0x13   :  { %s396_s29 = smov [#allocation6]   ;;  %s343_s7 = scalar_lea.hbm %s481_s1, 2048 }
  0x14   :  { %s29_s30 = sshll.u32 %s396_s29, 4  ;;  %p344_p8 = scmp.ne.s32.totalorder %s481_s1, %s343_s7  ;;  %s30_s30 = int_to_ptr.vmem [resolvable:$true] %s29_s30 }
  0x15   :  { %p347_p9 = scmp.lt.u32.totalorder %s343_s7, %s481_s1 }
  0x17   :  { %p349_p10 = pnand %p347_p9, %p344_p8 }
  0x19   :  { %352 = shalt.err (!%p349_p10)
}
  0x1a   :  { %s353_s12 = scalar_lea.vmem %s30_s30, 2048  ;;  %p358_p12 = scmp.lt.s32.totalorder %s30_s30, %s30_s30 }
  0x1b   :  { %p354_p11 = scmp.ne.s32.totalorder %s30_s30, %s353_s12  ;;  %p359_p13 = scmp.lt.s32.totalorder %s353_s12, %s353_s12 }
  0x1d   :  { %p360_p0 = por %p359_p13, %p358_p12 }
  0x1f   :  { %p361_p1 = pnand %p360_p0, %p354_p11 }
  0x21   :  { %364 = shalt.err (!%p361_p1)
}
  0x22   :  { %35 = dma.hbm_to_vmem [thread:$0]  %s481_s1, 2048, %s30_s30, [#allocation7], %s394_s25, %s394_s25, %s395_s26  }
  0x23   :  { %387 = dma.done.wait [#allocation4], 384  }
  0x24   :  { %388 = vsyncadd [#allocation4], 4294966912 }
  0x25   :  { %389 = dma.done.wait [#allocation7], 2048  }
  0x26   :  { %390 = vsyncadd [#allocation7], 4294965248  ;;  %v397_v0 = vmov 0.0|0.0   ;;  %vm398_vm0 = vmmov 0   ;;  %v399_v1 = vmov 0.0   ;;  %v59_v2 = vld [vmem:[#allocation6] sm:$0xff] }
  0x27   :  { %297 = vmatprep.subr.bf16.mxu1 %v397_v0  ;;  %273 = vmatprep.subr.bf16.mxu0 %v397_v0  ;;  %v60_v3 = vld [vmem:[#allocation6 + $0x8] sm:$0xff]  ;;  %v61_v4 = vld [vmem:[#allocation6 + $0x10] sm:$0xff]  ;;  %v62_v6 = vld [vmem:[#allocation6 + $0x18] sm:$0xff]  ;;  %s400_s17 = smov [#allocation8]  }
  0x28   :  { %267 = vmatprep.mubr.msk.f32.mxu1 %vm398_vm0, %v399_v1  ;;  %264 = vmatprep.mubr.msk.f32.mxu0 %vm398_vm0, %v399_v1  ;;  %v274_v5 = vpack.c.bf16 %v60_v3, %v59_v2  ;;  %v277_v7 = vpack.c.bf16 %v62_v6, %v61_v4  ;;  %v63_v8 = vld [vmem:[#allocation6 + $0x20] sm:$0xff]  ;;  %v64_v9 = vld [vmem:[#allocation6 + $0x28] sm:$0xff]  ;;  %v65_v11 = vld [vmem:[#allocation6 + $0x30] sm:$0xff]  ;;  %s198_s18 = sshll.u32 %s400_s17, 4  ;;  %s199_s18 = int_to_ptr.vmem [resolvable:$true] %s198_s18 }
  0x29   :  { %v280_v10 = vpack.c.bf16 %v64_v9, %v63_v8  ;;  %v66_v12 = vld [vmem:[#allocation6 + $0x38] sm:$0xff]  ;;  %v67_v14 = vld [vmem:[#allocation6 + $0x40] sm:$0xff]  ;;  %v68_v15 = vld [vmem:[#allocation6 + $0x48] sm:$0xff]  ;;  %p370_p3 = scmp.lt.s32.totalorder %s199_s18, %s199_s18 }
  0x2a   :  { %305 = vmatpush3.bf16.msra.mxu1 %v274_v5  ;;  %275 = vmatpush3.bf16.msra.mxu0 %v274_v5  ;;  %v283_v13 = vpack.c.bf16 %v66_v12, %v65_v11  ;;  %v286_v16 = vpack.c.bf16 %v68_v15, %v67_v14  ;;  %v69_v17 = vld [vmem:[#allocation6 + $0x50] sm:$0xff]  ;;  %v70_v18 = vld [vmem:[#allocation6 + $0x58] sm:$0xff]  ;;  %v71_v20 = vld [vmem:[#allocation6 + $0x60] sm:$0xff] }
  0x2b   :  { %298 = vmatprep.subr.bf16.mxu1 %v397_v0  ;;  %276 = vmatprep.subr.bf16.mxu0 %v397_v0  ;;  %v289_v19 = vpack.c.bf16 %v70_v18, %v69_v17  ;;  %v72_v21 = vld [vmem:[#allocation6 + $0x68] sm:$0xff]  ;;  %v73_v23 = vld [vmem:[#allocation6 + $0x70] sm:$0xff]  ;;  %v74_v24 = vld [vmem:[#allocation6 + $0x78] sm:$0xff] }
  0x2c   :  { %v292_v22 = vpack.c.bf16 %v72_v21, %v71_v20  ;;  %v295_v25 = vpack.c.bf16 %v74_v24, %v73_v23  ;;  %v57_v26 = vld [vmem:[#allocation3 + $0x8] sm:$0xff]  ;;  %v56_v27 = vld [vmem:[#allocation3] sm:$0xff]  ;;  %v58_v28 = vld [vmem:[#allocation3 + $0x10] sm:$0xff] }
  0x2d   :  { %v211_v29 = vld [vmem:[%s482_s2] ss:$0 sm:$0xff]  ;;  %s365_s2 = scalar_lea.vmem %s199_s18, 384 }
  0x2e   :  { %306 = vmatpush3.bf16.msra.mxu1 %v277_v7  ;;  %278 = vmatpush3.bf16.msra.mxu0 %v277_v7  ;;  %v212_v31 = vld [vmem:[%s483_s3] ss:$0 sm:$0xff]  ;;  %p366_p2 = scmp.ne.s32.totalorder %s199_s18, %s365_s2  ;;  %p371_p4 = scmp.lt.s32.totalorder %s365_s2, %s365_s2 }
  0x2f   :  { %299 = vmatprep.subr.bf16.mxu1 %v397_v0  ;;  %279 = vmatprep.subr.bf16.mxu0 %v397_v0 }
  0x30   :  { %p372_p5 = por %p371_p4, %p370_p3 }
  0x32   :  { %307 = vmatpush3.bf16.msra.mxu1 %v280_v10  ;;  %281 = vmatpush3.bf16.msra.mxu0 %v280_v10  ;;  %p373_p6 = pnand %p372_p5, %p366_p2 }
  0x33   :  { %300 = vmatprep.subr.bf16.mxu1 %v397_v0  ;;  %282 = vmatprep.subr.bf16.mxu0 %v397_v0 }
  0x36   :  { %308 = vmatpush3.bf16.msra.mxu1 %v283_v13  ;;  %284 = vmatpush3.bf16.msra.mxu0 %v283_v13 }
  0x37   :  { %301 = vmatprep.subr.bf16.mxu1 %v397_v0  ;;  %285 = vmatprep.subr.bf16.mxu0 %v397_v0 }
  0x3a   :  { %309 = vmatpush3.bf16.msra.mxu1 %v286_v16  ;;  %287 = vmatpush3.bf16.msra.mxu0 %v286_v16 }
  0x3b   :  { %302 = vmatprep.subr.bf16.mxu1 %v397_v0  ;;  %288 = vmatprep.subr.bf16.mxu0 %v397_v0 }
  0x3e   :  { %310 = vmatpush3.bf16.msra.mxu1 %v289_v19  ;;  %290 = vmatpush3.bf16.msra.mxu0 %v289_v19 }
  0x3f   :  { %303 = vmatprep.subr.bf16.mxu1 %v397_v0  ;;  %291 = vmatprep.subr.bf16.mxu0 %v397_v0 }
  0x42   :  { %311 = vmatpush3.bf16.msra.mxu1 %v292_v22  ;;  %293 = vmatpush3.bf16.msra.mxu0 %v292_v22 }
  0x43   :  { %304 = vmatprep.subr.bf16.mxu1 %v397_v0  ;;  %294 = vmatprep.subr.bf16.mxu0 %v397_v0 }
  0x46   :  { %312 = vmatpush3.bf16.msra.mxu1 %v295_v25  ;;  %296 = vmatpush3.bf16.msra.mxu0 %v295_v25 }
  0x49   :  { %268 = vmatmul.mubr.f32.vlgmr.msra.gmra.mrb[0].mxu1 %v57_v26  ;;  %265 = vmatmul.mubr.f32.vlgmr.msra.gmra.mrb[0].mxu0 %v56_v27 }
  0x4a   :  { %270 = vmatprep.mubr.msk.f32.mxu1 %vm398_vm0, %v399_v1 }
  0x4d   :  { %271 = vmatmul.mubr.f32.gmra.mrb[2].mxu1 %v58_v28 }
 0x11c   :  { %v146_v30 = vpop.f32.mrb[0].mxu1  ;;  %v141_v32 = vpop.f32.mrb[0].mxu0 }
 0x11d   :  { %v175_v33 = vmul.f32 %v211_v29, %v146_v30  ;;  %v269_v34 = vpop.f32.mrb[1].mxu1  ;;  %v174_v35 = vmul.f32 %v211_v29, %v141_v32  ;;  %v266_v36 = vpop.f32.mrb[1].mxu0 }
 0x11f   :  { %v185_v37 = vadd.f32 %v212_v31, %v175_v33  ;;  %v184_v38 = vadd.f32 %v212_v31, %v174_v35 }
 0x120   :  { %v151_v39 = vpop.f32.mrb[2].mxu1 }
 0x121   :  { %v188_v40 = vmax.f32 %v185_v37, 0.0  ;;  %v187_v41 = vmax.f32 %v184_v38, 0.0  ;;  %v176_v42 = vmul.f32 %v211_v29, %v151_v39  ;;  %v272_v43 = vpop.f32.mrb[3].mxu1 }
 0x123   :  { %191 = vst [vmem:[#allocation8 + $0x8] sm:$0xff] %v188_v40  ;;  %190 = vst [vmem:[#allocation8] sm:$0xff] %v187_v41  ;;  %v186_v44 = vadd.f32 %v212_v31, %v176_v42 }
 0x125   :  { %v189_v45 = vmax.f32 %v186_v44, 0.0 }
 0x127   :  { %192 = vst [vmem:[#allocation8 + $0x10] sm:$0xff] %v189_v45 }
 0x128   :  { %376 = shalt.err (!%p373_p6)
}
 0x129   :  { %s377_s20 = scalar_lea.hbm %s484_s4, 384 }
 0x12a   :  { %p378_p7 = scmp.ne.s32.totalorder %s484_s4, %s377_s20  ;;  %p381_p8 = scmp.lt.u32.totalorder %s377_s20, %s484_s4 }
 0x12c   :  { %p383_p9 = pnand %p381_p8, %p378_p7 }
 0x12e   :  { %386 = shalt.err (!%p383_p9)
}
 0x12f   :  { %204 = dma.vmem_to_hbm [thread:$0]  %s199_s18, 384, %s484_s4, [#allocation5], %s394_s25, %s394_s25, %s395_s26  }
 0x130   :  { %391 = dma.done.wait [#allocation5], 384  }
 0x131   :  { %392 = vsyncadd [#allocation5], 4294966912 }
 0x132   :  { %208 = vsyncpa [#allocation4], 1 }
 0x133   :  { %209 = vsyncpa [#allocation7], 1 }
 0x134   :  { %210 = vsyncpa [#allocation5], 1 }

</bundles_post_ra>
